<compile_context>
chip_gen: v7x
topology: tpu7x:2x2x1
jax: 0.10.0
libtpu: 0.0.40
codegen_flags: <defaults>
</compile_context>

<pallas_src>
import functools

import jax
import jax.numpy as jnp
from jax.experimental import pallas as pl
from jax.experimental.pallas import tpu as pltpu

# Module "constructor" argument (vertical shift, horizontal shift).
SHIFT = (1, -2)

# Per-block byte target for the *padded* footprint of one operand.  With
# double-buffered input + output the pipelined working set is ~4 x 3 MiB =
# 12 MiB: under the scoped-VMEM default on v5e (16 MiB) and v6e/v7x (32 MiB).
_TARGET_BLOCK_BYTES = 3 * 1024 * 1024
_MIN_GRID_STEPS = 4  # >= 2 steps per TensorCore on dual-core (v7x) parts.


def _shift_kernel(x_ref, mask_ref, o_ref, *, shift_lanes):
    """Shift a (bc, H*W) block of flattened image planes, zero-filling borders.

    out[r, k] = in[r, k - shift_lanes] where the precomputed mask is 1, else 0.
    The roll wraps elements from neighbouring image rows / planes into exactly
    the positions the mask zeroes, so the result is exact.
    """
    vals = x_ref[...]
    if shift_lanes:  # static Python int; XLU lane rotation, jnp.roll semantics
        vals = pltpu.roll(vals, shift_lanes, axis=1)
    # Broadcast the int32 mask row across sublanes first (cheap, definitely
    # supported), then compare -> select.  One dense full-tile store.
    mask = jnp.broadcast_to(mask_ref[...], vals.shape) != 0
    o_ref[...] = jnp.where(mask, vals, jnp.zeros((), o_ref.dtype))


def shift2d(x: jax.Array, shift=SHIFT) -> jax.Array:
    """Pallas implementation of Shift2d.forward for NCHW input."""
    n, c, h, w = x.shape
    vert, horz = shift

    # Pad-then-crop with |shift| >= the spatial extent zeroes everything.
    if abs(vert) >= h or abs(horz) >= w:
        return jnp.zeros_like(x)

    nc, hw = n * c, h * w
    xf = x.reshape(nc, hw)  # free: NCHW is contiguous
    itemsize = x.dtype.itemsize

    # ---- Block sizing against the *padded* VMEM footprint. ----
    sub = max(8, 32 // itemsize)          # sublane tile: 8 f32 / 16 bf16 / 32 i8
    lane_hw = pl.cdiv(hw, 128) * 128      # lane-padded row length
    row_bytes = lane_hw * itemsize
    bc = max(1, min(nc, _TARGET_BLOCK_BYTES // row_bytes))
    # Keep >= ~_MIN_GRID_STEPS grid steps when the tensor is big enough, but
    # never shrink a block below one sublane tile of rows.
    bc = min(bc, max(sub, pl.cdiv(nc, _MIN_GRID_STEPS)))
    if bc > sub:
        bc -= bc % sub                    # full sublane tiles; ragged tail -> grid
    if bc < sub and nc > bc:
        bc = min(nc, sub)                 # keep (8,128) block rule (huge-H*W edge case)
    grid = (pl.cdiv(nc, bc),)

    # ---- Precomputed lane-validity mask: source (y - vert, x - horz) in range. ----
    ky = jnp.arange(h, dtype=jnp.int32)[:, None]
    kx = jnp.arange(w, dtype=jnp.int32)[None, :]
    valid = ((ky >= max(vert, 0)) & (ky < h + min(vert, 0))
             & (kx >= max(horz, 0)) & (kx < w + min(horz, 0)))
    mask = valid.astype(jnp.int32).reshape(1, hw)

    kernel = functools.partial(_shift_kernel,
                               shift_lanes=(vert * w + horz) % hw)

    out = pl.pallas_call(
        kernel,
        out_shape=jax.ShapeDtypeStruct((nc, hw), x.dtype),
        grid=grid,
        in_specs=[pl.BlockSpec((bc, hw), lambda i: (i, 0)),
                  pl.BlockSpec((1, hw), lambda i: (0, 0))],
        out_specs=pl.BlockSpec((bc, hw), lambda i: (i, 0)),
        compiler_params=pltpu.CompilerParams(
            dimension_semantics=("parallel",)),
        cost_estimate=pl.CostEstimate(
            flops=0, transcendentals=0,
            bytes_accessed=2 * nc * hw * itemsize),
    )(xf, mask)
    return out.reshape(n, c, h, w)


def shift2d_ref(x: jax.Array, shift=SHIFT) -> jax.Array:
    """Pure-JAX reference mirroring the PyTorch ZeroPad2d + Crop2d exactly."""
    vert, horz = shift
    y_a, y_b = (abs(vert), 0)
    x_a, x_b = (abs(horz), 0)
    if vert < 0:
        y_a, y_b = y_b, y_a
    if horz < 0:
        x_a, x_b = x_b, x_a
    # ZeroPad2d((x_a, x_b, y_a, y_b)): pad left=x_a, right=x_b, top=y_a, bottom=y_b
    p = jnp.pad(x, ((0, 0), (0, 0), (y_a, y_b), (x_a, x_b)))
    # Crop2d((x_b, x_a, y_b, y_a)): crop left=x_b, right=x_a, top=y_b, bottom=y_a
    ph, pw = p.shape[-2], p.shape[-1]
    return p[:, :, y_b:ph - y_a, x_b:pw - x_a]


if __name__ == "__main__":
    key = jax.random.PRNGKey(0)
    # Shift2d has no learnable parameters; only the input tensor is needed.
    x = jax.random.normal(key, (2, 4, 16, 16), dtype=jnp.float32)

    out = jax.block_until_ready(shift2d(x, SHIFT))
    ref = shift2d_ref(x, SHIFT)
    assert out.shape == x.shape and out.dtype == x.dtype
    assert jnp.allclose(out, ref), "Pallas Shift2d does not match reference"

    # Extra sign-combination checks (small, deterministic).
    for s in [(0, 0), (-3, 4), (2, 0), (0, -1), (5, 3)]:
        o = jax.block_until_ready(shift2d(x, s))
        assert jnp.allclose(o, shift2d_ref(x, s)), f"mismatch for shift={s}"

    print("KERNEL_OK")
</pallas_src>

<mosaic_0001>
module attributes {stable_mosaic.version = 11 : i64} {
  func.func @_shift_kernel(%arg0: i32, %arg1: memref<8x256xf32, #tpu.memory_space<vmem>>, %arg2: memref<1x256xi32, #tpu.memory_space<vmem>>, %arg3: memref<8x256xf32, #tpu.memory_space<vmem>>) attributes {dimension_semantics = [#tpu.dimension_semantics<parallel>], iteration_bounds = array<i64: 1>, scalar_prefetch = 0 : i64, scratch_operands = 0 : i64, tpu.core_type = #tpu.core_type<tc>, window_params = [{transform_indices = @transform_0, window_bounds = array<i64: 8, 256>}, {pipeline_mode = #tpu.pipeline_mode<synchronous>, transform_indices = @transform_1, window_bounds = array<i64: 1, 256>}, {transform_indices = @transform_2, window_bounds = array<i64: 8, 256>}]} {
    %c0 = arith.constant 0 : index
    %c0_0 = arith.constant 0 : index
    %0 = vector.load %arg1[%c0, %c0_0] : memref<8x256xf32, #tpu.memory_space<vmem>>, vector<8x256xf32>
    %c14_i32 = arith.constant 14 : i32
    %1 = tpu.dynamic_rotate %0 by %c14_i32 dim 1 : vector<8x256xf32>, i32 -> vector<8x256xf32>
    %c0_1 = arith.constant 0 : index
    %c0_2 = arith.constant 0 : index
    %2 = vector.load %arg2[%c0_1, %c0_2] : memref<1x256xi32, #tpu.memory_space<vmem>>, vector<1x256xi32>
    %3 = vector.shape_cast %2 : vector<1x256xi32> to vector<1x256xi32>
    %4 = vector.broadcast %3 : vector<1x256xi32> to vector<8x256xi32>
    %c0_i32 = arith.constant 0 : i32
    %5 = vector.broadcast %c0_i32 : i32 to vector<8x256xi32>
    %6 = arith.cmpi ne, %4, %5 : vector<8x256xi32>
    %cst = arith.constant 0.000000e+00 : f32
    %7 = vector.broadcast %cst : f32 to vector<8x256xf32>
    %8 = arith.select %6, %1, %7 : vector<8x256xi1>, vector<8x256xf32>
    %c0_3 = arith.constant 0 : index
    %c0_4 = arith.constant 0 : index
    %9 = vector.load %arg3[%c0_3, %c0_4] : memref<8x256xf32, #tpu.memory_space<vmem>>, vector<8x256xf32>
    tpu.vector_store %arg3[%c0_3, %c0_4], %8 {strides = array<i32>} : memref<8x256xf32, #tpu.memory_space<vmem>>, vector<8x256xf32>,
    return
  }
  func.func @transform_0(%arg0: i32) -> (i32, i32) {
    %c0_i32 = arith.constant 0 : i32
    %c0_i32_0 = arith.constant 0 : i32
    return %arg0, %c0_i32 : i32, i32
  }
  func.func @transform_1(%arg0: i32) -> (i32, i32) {
    %c0_i32 = arith.constant 0 : i32
    %c0_i32_0 = arith.constant 0 : i32
    %c0_i32_1 = arith.constant 0 : i32
    return %c0_i32, %c0_i32_0 : i32, i32
  }
  func.func @transform_2(%arg0: i32) -> (i32, i32) {
    %c0_i32 = arith.constant 0 : i32
    %c0_i32_0 = arith.constant 0 : i32
    return %arg0, %c0_i32 : i32, i32
  }
}

</mosaic_0001>

<bundles_post_ra>
// kernel: tpu_custom_call.1
= control target key start
LH: loop header
LB: loop body
LE: loop exit
PB: predicated region body
PF: predicated region fallthrough
CT: control target
= control target key end

     0   :  { %7 = vsyncpa [#allocation3], 0  ;;  %s161_s0 = inlined_call_operand.hbm [shape: f32[8,256], index: 0, kind: input, shape index: {}]   ;;  %s162_s1 = inlined_call_operand.vmem [shape: s32[1,256], index: 1, kind: input, shape index: {}]   ;;  %s163_s2 = inlined_call_operand.hbm [shape: f32[8,256], index: 2, kind: output, shape index: {}]  }
   0x1   :  { %8 = vsyncpa [#allocation4], 0  ;;  %s116_s9 = smov [#allocation2]   ;;  %s68_s13 = scalar_lea.hbm %s161_s0, 256 }
   0x2   :  { %s15_s10 = sshll.u32 %s116_s9, 4  ;;  %p69_p0 = scmp.ne.s32.totalorder %s161_s0, %s68_s13  ;;  %s16_s10 = int_to_ptr.vmem [resolvable:$true] %s15_s10 }
   0x3   :  { %p72_p1 = scmp.lt.u32.totalorder %s68_s13, %s161_s0 }
   0x5   :  { %p74_p2 = pnand %p72_p1, %p69_p0 }
   0x7   :  { %77 = shalt.err (!%p74_p2)
}
   0x8   :  { %s78_s18 = scalar_lea.vmem %s16_s10, 256  ;;  %p83_p4 = scmp.lt.s32.totalorder %s16_s10, %s16_s10 }
   0x9   :  { %p79_p3 = scmp.ne.s32.totalorder %s16_s10, %s78_s18  ;;  %p84_p5 = scmp.lt.s32.totalorder %s78_s18, %s78_s18 }
   0xb   :  { %p85_p6 = por %p84_p5, %p83_p4 }
   0xd   :  { %p86_p7 = pnand %p85_p6, %p79_p3 }
   0xf   :  { %89 = shalt.err (!%p86_p7)
}
  0x10   :  { %18 = dma.hbm_to_vmem [thread:$0]  %s161_s0, 256, %s16_s10, [#allocation3]  }
  0x11   :  { %112 = dma.done.wait [#allocation3], 256  }
  0x12   :  { %113 = vsyncadd [#allocation3], 4294967040  ;;  %v24_v0 = vld [vmem:[#allocation2] sm:$0xff]  ;;  %s117_s21 = smov 14   ;;  %v25_v1 = vld [vmem:[#allocation2 + $0x8] sm:$0xff]  ;;  %v30_v2 = vlaneseq  ;;  %s118_s0 = smov [#allocation5]  }
  0x13   :  { %26 = vrot.lane.b32.xlu0 %v24_v0, %s117_s21  ;;  %v35_v6 = vld [vmem:[%s162_s1] sm:$0x3]  ;;  %s56_s24 = sshll.u32 %s118_s0, 4  ;;  %s57_s24 = int_to_ptr.vmem [resolvable:$true] %s56_s24 }
  0x14   :  { %v37_v3 = vshrl.u32 %v30_v2, 7  ;;  %v31_v7 = vand.u32 127, %v30_v2  ;;  %s90_s25 = scalar_lea.vmem %s57_s24, 256  ;;  %p95_p9 = scmp.lt.s32.totalorder %s57_s24, %s57_s24 }
  0x15   :  { %p91_p8 = scmp.ne.s32.totalorder %s57_s24, %s90_s25  ;;  %p96_p10 = scmp.lt.s32.totalorder %s90_s25, %s90_s25 }
  0x16   :  { %v38_v4 = vsub.s32 0, %v37_v3  ;;  %v42_v5 = vsub.s32 1, %v37_v3  ;;  %vm32_vm0 = vcmp.lt.s32.totalorder %v31_v7, 14 }
  0x17   :  { %28 = vrot.lane.b32.xlu0 %v25_v1, %s117_s21  ;;  %p97_p11 = por %p96_p10, %p95_p9 }
  0x18   :  { %v39_v8 = vrot.slane %v35_v6, %v38_v4  ;;  %v43_v9 = vrot.slane %v35_v6, %v42_v5 }
  0x19   :  { %p98_p12 = pnand %p97_p11, %p91_p8 }
  0x1a   :  { %vm44_vm1 = vcmp.ne.s32.totalorder %v39_v8, 0  ;;  %vm45_vm2 = vcmp.ne.s32.totalorder %v43_v9, 0 }
  0x85   :  { %v27_v10 = vpop.permute.xlu0 %26 }
  0x89   :  { %v29_v11 = vpop.permute.xlu0 %28 }
  0x8a   :  { %v33_v12 = vsel %vm32_vm0, %v27_v10, %v29_v11  ;;  %v34_v13 = vsel %vm32_vm0, %v29_v11, %v27_v10 }
  0x8b   :  { %v46_v14 = vsel %vm44_vm1, %v34_v13, 0.0  ;;  %v47_v15 = vsel %vm45_vm2, %v33_v12, 0.0 }
  0x8c   :  { %48 = vst [vmem:[#allocation5] sm:$0xff] %v46_v14  ;;  %49 = vst [vmem:[#allocation5 + $0x8] sm:$0xff] %v47_v15 }
  0x8d   :  { %101 = shalt.err (!%p98_p12)
}
  0x8e   :  { %s102_s27 = scalar_lea.hbm %s163_s2, 256 }
  0x8f   :  { %p103_p13 = scmp.ne.s32.totalorder %s163_s2, %s102_s27  ;;  %p106_p0 = scmp.lt.u32.totalorder %s102_s27, %s163_s2 }
  0x91   :  { %p108_p1 = pnand %p106_p0, %p103_p13 }
  0x93   :  { %111 = shalt.err (!%p108_p1)
}
  0x94   :  { %59 = dma.vmem_to_hbm [thread:$0]  %s57_s24, 256, %s163_s2, [#allocation4]  }
  0x95   :  { %114 = dma.done.wait [#allocation4], 256  }
  0x96   :  { %115 = vsyncadd [#allocation4], 4294967040 }
  0x97   :  { %63 = vsyncpa [#allocation3], 1 }
  0x98   :  { %64 = vsyncpa [#allocation4], 1 }

</bundles_post_ra>
